<compile_context>
chip_gen: v7x
topology: tpu7x:2x2x1
jax: 0.10.0
libtpu: 0.0.40
codegen_flags: <defaults>
</compile_context>

<pallas_src>
import jax
import jax.numpy as jnp
from jax.experimental import pallas as pl
from jax.experimental.pallas import tpu as pltpu

_TB_MAX = 4096  # batch-tile rows (multiple of 128); sweepable in {2048, 4096, 8192}


def _round_up(n, m):
    return ((n + m - 1) // m) * m


def _v_critic_kernel(x_ref, w1_ref, b1_ref, w2_ref, b2_ref, o_ref):
    # In-kernel bf16 cast of the activation tile (no separate HBM cast pass).
    x_bf16 = x_ref[...].astype(jnp.bfloat16)                      # (TB, K)
    # fc1, transposed on the MXU: contract w1 (H, K) against x (TB, K) over K
    # -> h^T of shape (H, TB): batch sits in lanes, f32 accumulation.
    h_t = jax.lax.dot_general(
        w1_ref[...], x_bf16,
        dimension_numbers=(((1,), (1,)), ((), ())),                # A @ B^T
        preferred_element_type=jnp.float32)                        # (H, TB) f32
    # Bias + tanh in f32 (VPU / EUP); b1 is an (H, 1) column lane-broadcast.
    h_t = jnp.tanh(h_t + b1_ref[...])
    # fc2 with output_size == 1: VPU multiply + sublane reduce over H instead
    # of a degenerate (H, 1) MXU pass; b2 is a scalar read from SMEM.
    v = jnp.sum(h_t * w2_ref[...], axis=0, keepdims=True)          # (1, TB)
    o_ref[...] = (v + b2_ref[0, 0]).astype(o_ref.dtype)


def prepare_params(w1, b1, w2, b2, mxu_dtype=jnp.bfloat16):
    """One-time re-layout of PyTorch-style Linear parameters.

    w1: (hidden, input_size), b1: (hidden,), w2: (output, hidden), b2: (output,).
    Call once at init so the per-step forward has no transpose/reshape glue.
    """
    hidden, _ = w1.shape
    out_size = w2.shape[0]
    if out_size != 1:
        # TODO(synk): output_size > 1 would need a lane-dense, 128-padded MXU
        # fc2 instead of the sublane reduce; V_Critic is used with output_size=1.
        raise NotImplementedError("V_Critic Pallas kernel assumes output_size == 1")
    return dict(
        w1=jnp.asarray(w1, jnp.float32).astype(mxu_dtype),     # (hidden, input) — PyTorch layout
        b1=jnp.asarray(b1, jnp.float32).reshape(hidden, 1),    # (hidden, 1) column
        w2=jnp.asarray(w2, jnp.float32).reshape(hidden, 1),    # (hidden, 1) column
        b2=jnp.asarray(b2, jnp.float32).reshape(1, 1),         # scalar -> SMEM
    )


def v_critic_forward(x, params):
    """x: (B, input_size). params from prepare_params(). Returns (B, 1) f32."""
    w1, b1, w2, b2 = params["w1"], params["b1"], params["w2"], params["b2"]
    batch, input_size = x.shape
    hidden, k = w1.shape
    assert k == input_size, "input feature size mismatch"

    # Batch tile: a multiple of 128 (lane width of the packed output).  Use
    # ~half the batch (rounded up to 128) when that is below the cap so there
    # are >= 2 grid steps and the "parallel" axis shards across both
    # TensorCores on v7x; cap at _TB_MAX to amortize per-step overhead while
    # staying far under the scoped-VMEM default on all generations.
    tb = min(_TB_MAX, max(128, _round_up(pl.cdiv(batch, 2), 128)))
    num_tiles = pl.cdiv(batch, tb)
    padded = num_tiles * tb

    # Keep every block fully in-bounds (no-op when batch is already aligned;
    # padded rows are zeros -> finite values, sliced off below).
    if padded != batch:
        x = jnp.pad(x, ((0, padded - batch), (0, 0)))

    out_row = pl.pallas_call(
        _v_critic_kernel,
        out_shape=jax.ShapeDtypeStruct((1, padded), jnp.float32),
        grid=(num_tiles,),
        in_specs=[
            pl.BlockSpec((tb, input_size), lambda i: (i, 0)),       # x: tiled over batch
            pl.BlockSpec((hidden, input_size), lambda i: (0, 0)),   # w1: VMEM-resident (bf16)
            pl.BlockSpec((hidden, 1), lambda i: (0, 0)),            # b1 column: VMEM-resident
            pl.BlockSpec((hidden, 1), lambda i: (0, 0)),            # w2 column: VMEM-resident
            pl.BlockSpec(memory_space=pltpu.MemorySpace.SMEM),      # b2 scalar in SMEM
        ],
        out_specs=pl.BlockSpec((1, tb), lambda i: (0, i)),          # lane-packed critic values
        compiler_params=pltpu.CompilerParams(
            dimension_semantics=("parallel",),  # batch tiles shard across TCs on v7x
        ),
    )(x, w1, b1, w2, b2)

    # Lane-packed (1, padded) row -> (B, 1) column; tiny slice + free reshape.
    return out_row[0, :batch].reshape(batch, 1)


def reference_forward(x, w1, b1, w2, b2):
    h = jnp.tanh(x @ w1.T + b1)
    return h @ w2.T + b2


if __name__ == "__main__":
    # Small shapes consistent with the module: V_Critic(input_size=32, output_size=1)
    batch = 8
    input_size = 32
    hidden_size = 128
    output_size = 1

    key = jax.random.PRNGKey(0)
    kx, k1, k2, k3, k4 = jax.random.split(key, 5)

    x = jax.random.normal(kx, (batch, input_size), dtype=jnp.float32)

    # PyTorch Linear layout: W (out, in), b (out,)
    w1 = jax.random.uniform(k1, (hidden_size, input_size), jnp.float32,
                            -1.0 / jnp.sqrt(input_size), 1.0 / jnp.sqrt(input_size))
    b1 = jax.random.uniform(k2, (hidden_size,), jnp.float32,
                            -1.0 / jnp.sqrt(input_size), 1.0 / jnp.sqrt(input_size))
    w2 = jax.random.uniform(k3, (output_size, hidden_size), jnp.float32,
                            -1.0 / jnp.sqrt(hidden_size), 1.0 / jnp.sqrt(hidden_size))
    b2 = jax.random.uniform(k4, (output_size,), jnp.float32,
                            -1.0 / jnp.sqrt(hidden_size), 1.0 / jnp.sqrt(hidden_size))

    # One-time parameter prep (no per-call transposes/reshapes/casts).
    params = prepare_params(w1, b1, w2, b2)

    fwd = jax.jit(v_critic_forward)
    out = fwd(x, params)
    jax.block_until_ready(out)

    ref = reference_forward(x, w1, b1, w2, b2)
    assert out.shape == (batch, output_size), out.shape
    # bf16 MXU operands -> slightly looser tolerance vs the f32 reference.
    assert jnp.allclose(out, ref, atol=2e-2, rtol=2e-2), "mismatch vs reference"

    print("KERNEL_OK")
</pallas_src>

<mosaic_0001>
module attributes {stable_mosaic.version = 11 : i64} {
  func.func @_v_critic_kernel(%arg0: i32, %arg1: memref<128x32xf32, #tpu.memory_space<vmem>>, %arg2: memref<128x32xbf16, #tpu.memory_space<vmem>>, %arg3: memref<128x1xf32, #tpu.memory_space<vmem>>, %arg4: memref<128x1xf32, #tpu.memory_space<vmem>>, %arg5: memref<1x1xf32, #tpu.memory_space<smem>>, %arg6: memref<1x128xf32, #tpu.memory_space<vmem>>) attributes {dimension_semantics = [#tpu.dimension_semantics<parallel>], iteration_bounds = array<i64: 1>, scalar_prefetch = 0 : i64, scratch_operands = 0 : i64, tpu.core_type = #tpu.core_type<tc>, window_params = [{transform_indices = @transform_0, window_bounds = array<i64: 128, 32>}, {pipeline_mode = #tpu.pipeline_mode<synchronous>, transform_indices = @transform_1, window_bounds = array<i64: 128, 32>}, {pipeline_mode = #tpu.pipeline_mode<synchronous>, transform_indices = @transform_2, window_bounds = array<i64: 128, 1>}, {pipeline_mode = #tpu.pipeline_mode<synchronous>, transform_indices = @transform_3, window_bounds = array<i64: 128, 1>}, {transform_indices = @transform_4, window_bounds = array<i64: 1, 1>}, {transform_indices = @transform_5, window_bounds = array<i64: 1, 128>}]} {
    %c0 = arith.constant 0 : index
    %c0_0 = arith.constant 0 : index
    %0 = vector.load %arg1[%c0, %c0_0] : memref<128x32xf32, #tpu.memory_space<vmem>>, vector<128x32xf32>
    %1 = arith.truncf %0 : vector<128x32xf32> to vector<128x32xbf16>
    %c0_1 = arith.constant 0 : index
    %c0_2 = arith.constant 0 : index
    %2 = vector.load %arg2[%c0_1, %c0_2] : memref<128x32xbf16, #tpu.memory_space<vmem>>, vector<128x32xbf16>
    %cst = arith.constant dense<0.000000e+00> : vector<128x128xf32>
    %3 = tpu.matmul %2, %1, %cst {dimension_numbers = #tpu.dot_dimension_numbers<[1], [1], [0], [0], [0, 0, 1, 0], [], []>} : vector<128x32xbf16>, vector<128x32xbf16>, vector<128x128xf32> -> vector<128x128xf32>
    %c0_3 = arith.constant 0 : index
    %c0_4 = arith.constant 0 : index
    %4 = vector.load %arg3[%c0_3, %c0_4] : memref<128x1xf32, #tpu.memory_space<vmem>>, vector<128x1xf32>
    %5 = vector.broadcast %4 : vector<128x1xf32> to vector<128x128xf32>
    %6 = arith.addf %3, %5 : vector<128x128xf32>
    %7 = math.tanh %6 : vector<128x128xf32>
    %c0_5 = arith.constant 0 : index
    %c0_6 = arith.constant 0 : index
    %8 = vector.load %arg4[%c0_5, %c0_6] : memref<128x1xf32, #tpu.memory_space<vmem>>, vector<128x1xf32>
    %9 = vector.broadcast %8 : vector<128x1xf32> to vector<128x128xf32>
    %10 = arith.mulf %7, %9 : vector<128x128xf32>
    %cst_7 = arith.constant dense<0.000000e+00> : vector<128xf32>
    %11 = vector.multi_reduction <add>, %10, %cst_7 [0] : vector<128x128xf32> to vector<128xf32>
    %12 = vector.shape_cast %11 : vector<128xf32> to vector<1x128xf32>
    %c0_8 = arith.constant 0 : index
    %c0_9 = arith.constant 0 : index
    %13 = memref.load %arg5[%c0_8, %c0_9] : memref<1x1xf32, #tpu.memory_space<smem>>
    %14 = vector.broadcast %13 : f32 to vector<1x128xf32>
    %15 = arith.addf %12, %14 : vector<1x128xf32>
    %c0_10 = arith.constant 0 : index
    %c0_11 = arith.constant 0 : index
    %16 = vector.load %arg6[%c0_10, %c0_11] : memref<1x128xf32, #tpu.memory_space<vmem>>, vector<1x128xf32>
    tpu.vector_store %arg6[%c0_10, %c0_11], %15 {strides = array<i32>} : memref<1x128xf32, #tpu.memory_space<vmem>>, vector<1x128xf32>,
    return
  }
  func.func @transform_0(%arg0: i32) -> (i32, i32) {
    %c0_i32 = arith.constant 0 : i32
    %c0_i32_0 = arith.constant 0 : i32
    return %arg0, %c0_i32 : i32, i32
  }
  func.func @transform_1(%arg0: i32) -> (i32, i32) {
    %c0_i32 = arith.constant 0 : i32
    %c0_i32_0 = arith.constant 0 : i32
    %c0_i32_1 = arith.constant 0 : i32
    return %c0_i32, %c0_i32_0 : i32, i32
  }
  func.func @transform_2(%arg0: i32) -> (i32, i32) {
    %c0_i32 = arith.constant 0 : i32
    %c0_i32_0 = arith.constant 0 : i32
    %c0_i32_1 = arith.constant 0 : i32
    return %c0_i32, %c0_i32_0 : i32, i32
  }
  func.func @transform_3(%arg0: i32) -> (i32, i32) {
    %c0_i32 = arith.constant 0 : i32
    %c0_i32_0 = arith.constant 0 : i32
    %c0_i32_1 = arith.constant 0 : i32
    return %c0_i32, %c0_i32_0 : i32, i32
  }
  func.func @transform_4(%arg0: i32) -> (i32, i32) {
    %c0_i32 = arith.constant 0 : i32
    %c0_i32_0 = arith.constant 0 : i32
    %c0_i32_1 = arith.constant 0 : i32
    return %c0_i32, %c0_i32_0 : i32, i32
  }
  func.func @transform_5(%arg0: i32) -> (i32, i32) {
    %c0_i32 = arith.constant 0 : i32
    %c0_i32_0 = arith.constant 0 : i32
    return %c0_i32, %arg0 : i32, i32
  }
}

</mosaic_0001>

<bundles_post_ra>
// kernel: v_critic_forward.1
= control target key start
LH: loop header
LB: loop body
LE: loop exit
PB: predicated region body
PF: predicated region fallthrough
CT: control target
= control target key end

     0   :  { %vm198_vm0 = vcmask 261120   ;;  %v640_v3 = vmov 0   ;;  %s880_s0 = inlined_call_operand.vmem [shape: f32[128,32], index: 0, kind: input, shape index: {}]   ;;  %s881_s1 = inlined_call_operand.vmem [shape: bf16[128,32], index: 1, kind: input, shape index: {}]   ;;  %s882_s2 = inlined_call_operand.vmem [shape: f32[128,1], index: 2, kind: input, shape index: {}]   ;;  %s883_s3 = inlined_call_operand.vmem [shape: f32[128,1], index: 3, kind: input, shape index: {}]   ;;  %s884_s4 = inlined_call_operand.<no memory space> [shape: f32[1,1], index: 4, kind: input, shape index: {}]   ;;  %s885_s5 = inlined_call_operand.vmem [shape: f32[1,128], index: 5, kind: output, shape index: {}]  }
   0x1   :  { %v22_v0 = vld [vmem:[%s880_s0] sm:$0xff]  ;;  %v23_v1 = vld [vmem:[%s880_s0 + $0x8] sm:$0xff]  ;;  %v24_v2 = vld [vmem:[%s880_s0 + $0x10] sm:$0xff]  ;;  %598 = vset.pattern.permute.xlu0 %v640_v3  ;;  %599 = vset.pattern.permute.xlu1 %v640_v3 }
   0x2   :  { %v38_v4 = vpack.c.bf16 %v23_v1, %v22_v0  ;;  %v25_v5 = vld [vmem:[%s880_s0 + $0x18] sm:$0xff]  ;;  %v26_v8 = vld [vmem:[%s880_s0 + $0x20] sm:$0xff]  ;;  %v27_v9 = vld [vmem:[%s880_s0 + $0x28] sm:$0xff] }
   0x3   :  { %v39_v6 = vpack.c.bf16 %v25_v5, %v24_v2  ;;  %v600_v10 = vld [vmem:[%s881_s1] sm:$0xff]   ;;  %v40_v13 = vpack.c.bf16 %v27_v9, %v26_v8  ;;  %v64_v15 = vld [vmem:[%s882_s2 + $0x10] sm:$0xff]  ;;  %v29_v17 = vld [vmem:[%s880_s0 + $0x38] sm:$0xff] }
   0x4   :  { %581 = vmatprep.subr.msk.bf16.mxu0 %vm198_vm0, %v38_v4  ;;  %582 = vmatprep.subr.msk.bf16.mxu1 %vm198_vm0, %v38_v4  ;;  %v224_v7 = vsel %vm198_vm0, %v38_v4, 0  ;;  %v601_v11 = vld [vmem:[%s881_s1 + $0x20] sm:$0xff]   ;;  %v28_v16 = vld [vmem:[%s880_s0 + $0x30] sm:$0xff]  ;;  %v63_v18 = vld [vmem:[%s882_s2 + $0x8] sm:$0xff] }
   0x5   :  { %534 = vmatpush3.bf16.xpose.msra.mxu0 %v224_v7  ;;  %573 = vmatpush3.bf16.xpose.msra.mxu1 %v224_v7  ;;  %v227_v12 = vsel %vm198_vm0, %v39_v6, 0  ;;  %v62_v14 = vld [vmem:[%s882_s2] sm:$0xff]  ;;  %v65_v19 = vld [vmem:[%s882_s2 + $0x18] sm:$0xff]  ;;  %v230_v21 = vsel %vm198_vm0, %v40_v13, 0  ;;  %v41_v22 = vpack.c.bf16 %v29_v17, %v28_v16  ;;  %v67_v23 = vld [vmem:[%s882_s2 + $0x28] sm:$0xff] }
   0x6   :  { %583 = vmatprep.subr.msk.bf16.mxu0 %vm198_vm0, %v39_v6  ;;  %584 = vmatprep.subr.msk.bf16.mxu1 %vm198_vm0, %v39_v6  ;;  %v66_v20 = vld [vmem:[%s882_s2 + $0x20] sm:$0xff]  ;;  %v68_v24 = vld [vmem:[%s882_s2 + $0x30] sm:$0xff]  ;;  %v31_v26 = vld [vmem:[%s880_s0 + $0x48] sm:$0xff] }
   0x7   :  { %549 = vmatprep.mubr.msk.bf16.mxu0 %vm198_vm0, %v600_v10  ;;  %557 = vmatprep.mubr.msk.bf16.mxu1 %vm198_vm0, %v601_v11  ;;  %v30_v25 = vld [vmem:[%s880_s0 + $0x40] sm:$0xff]  ;;  %v69_v27 = vld [vmem:[%s882_s2 + $0x38] sm:$0xff]  ;;  %v233_v29 = vsel %vm198_vm0, %v41_v22, 0  ;;  %v361_v31 = vld [vmem:[%s883_s3 + $0x8] sm:$0xff] }
   0x8   :  { %80 = vperm.xlu0 %598, %v62_v14   ;;  %90 = vperm.xlu1 %599, %v64_v15   ;;  %v360_v28 = vld [vmem:[%s883_s3] sm:$0xff]  ;;  %v42_v30 = vpack.c.bf16 %v31_v26, %v30_v25  ;;  %v32_v33 = vld [vmem:[%s880_s0 + $0x50] sm:$0xff]  ;;  %v33_v34 = vld [vmem:[%s880_s0 + $0x58] sm:$0xff] }
   0x9   :  { %v70_v32 = vld [vmem:[%s882_s2 + $0x40] sm:$0xff]  ;;  %v362_v35 = vld [vmem:[%s883_s3 + $0x10] sm:$0xff]  ;;  %v71_v36 = vld [vmem:[%s882_s2 + $0x48] sm:$0xff]  ;;  %v43_v38 = vpack.c.bf16 %v33_v34, %v32_v33 }
   0xa   :  { %v236_v37 = vsel %vm198_vm0, %v42_v30, 0  ;;  %v363_v39 = vld [vmem:[%s883_s3 + $0x18] sm:$0xff]  ;;  %v72_v40 = vld [vmem:[%s882_s2 + $0x50] sm:$0xff]  ;;  %v34_v41 = vld [vmem:[%s880_s0 + $0x60] sm:$0xff] }
   0xb   :  { %v35_v42 = vld [vmem:[%s880_s0 + $0x68] sm:$0xff]  ;;  %v364_v43 = vld [vmem:[%s883_s3 + $0x20] sm:$0xff]  ;;  %v73_v44 = vld [vmem:[%s882_s2 + $0x58] sm:$0xff]  ;;  %v239_v45 = vsel %vm198_vm0, %v43_v38, 0 }
   0xc   :  { %85 = vperm.xlu0 %598, %v63_v18   ;;  %95 = vperm.xlu1 %599, %v65_v19   ;;  %v44_v46 = vpack.c.bf16 %v35_v42, %v34_v41  ;;  %v365_v47 = vld [vmem:[%s883_s3 + $0x28] sm:$0xff]  ;;  %v74_v48 = vld [vmem:[%s882_s2 + $0x60] sm:$0xff]  ;;  %v36_v49 = vld [vmem:[%s880_s0 + $0x70] sm:$0xff] }
   0xd   :  { %536 = vmatpush3.bf16.xpose.msra.mxu0 %v227_v12  ;;  %574 = vmatpush3.bf16.xpose.msra.mxu1 %v227_v12  ;;  %v37_v50 = vld [vmem:[%s880_s0 + $0x78] sm:$0xff]  ;;  %v366_v51 = vld [vmem:[%s883_s3 + $0x30] sm:$0xff]  ;;  %v75_v52 = vld [vmem:[%s882_s2 + $0x68] sm:$0xff] }
   0xe   :  { %585 = vmatprep.subr.msk.bf16.mxu0 %vm198_vm0, %v40_v13  ;;  %586 = vmatprep.subr.msk.bf16.mxu1 %vm198_vm0, %v40_v13  ;;  %v242_v53 = vsel %vm198_vm0, %v44_v46, 0  ;;  %v45_v54 = vpack.c.bf16 %v37_v50, %v36_v49  ;;  %v367_v55 = vld [vmem:[%s883_s3 + $0x38] sm:$0xff]  ;;  %v76_v56 = vld [vmem:[%s882_s2 + $0x70] sm:$0xff]  ;;  %v368_v57 = vld [vmem:[%s883_s3 + $0x40] sm:$0xff] }
   0xf   :  { %v77_v58 = vld [vmem:[%s882_s2 + $0x78] sm:$0xff]  ;;  %v369_v60 = vld [vmem:[%s883_s3 + $0x48] sm:$0xff]  ;;  %v370_v61 = vld [vmem:[%s883_s3 + $0x50] sm:$0xff] }
  0x10   :  { %100 = vperm.xlu0 %598, %v66_v20   ;;  %105 = vperm.xlu1 %599, %v67_v23   ;;  %v245_v59 = vsel %vm198_vm0, %v45_v54, 0  ;;  %v602_v62 = vld [vmem:[%s881_s1 + $0x8] sm:$0xff]   ;;  %v371_v0 = vld [vmem:[%s883_s3 + $0x58] sm:$0xff]  ;;  %v604_v1 = vld [vmem:[%s881_s1 + $0x10] sm:$0xff]  }
  0x11   :  { %v603_v63 = vld [vmem:[%s881_s1 + $0x28] sm:$0xff]   ;;  %v605_v2 = vld [vmem:[%s881_s1 + $0x30] sm:$0xff]   ;;  %v372_v3 = vld [vmem:[%s883_s3 + $0x60] sm:$0xff] }
  0x12   :  { %v373_v4 = vld [vmem:[%s883_s3 + $0x68] sm:$0xff]  ;;  %v374_v5 = vld [vmem:[%s883_s3 + $0x70] sm:$0xff]  ;;  %v606_v6 = vld [vmem:[%s881_s1 + $0x18] sm:$0xff]  }
  0x13   :  { %v607_v7 = vld [vmem:[%s881_s1 + $0x38] sm:$0xff]  }
  0x14   :  { %110 = vperm.xlu0 %598, %v68_v24   ;;  %115 = vperm.xlu1 %599, %v69_v27   ;;  %v375_v8 = vld [vmem:[%s883_s3 + $0x78] sm:$0xff] }
  0x15   :  { %538 = vmatpush3.bf16.xpose.msra.mxu0 %v230_v21  ;;  %575 = vmatpush3.bf16.xpose.msra.mxu1 %v230_v21 }
  0x16   :  { %587 = vmatprep.subr.msk.bf16.mxu0 %vm198_vm0, %v41_v22  ;;  %588 = vmatprep.subr.msk.bf16.mxu1 %vm198_vm0, %v41_v22 }
  0x18   :  { %378 = vperm.xlu0 %598, %v360_v28   ;;  %383 = vperm.xlu1 %599, %v361_v31  }
  0x1c   :  { %120 = vperm.xlu0 %598, %v70_v32   ;;  %388 = vperm.xlu1 %599, %v362_v35  }
  0x1d   :  { %540 = vmatpush3.bf16.xpose.msra.mxu0 %v233_v29  ;;  %576 = vmatpush3.bf16.xpose.msra.mxu1 %v233_v29 }
  0x1e   :  { %589 = vmatprep.subr.msk.bf16.mxu0 %vm198_vm0, %v42_v30  ;;  %590 = vmatprep.subr.msk.bf16.mxu1 %vm198_vm0, %v42_v30 }
  0x20   :  { %125 = vperm.xlu0 %598, %v71_v36   ;;  %393 = vperm.xlu1 %599, %v363_v39  }
  0x24   :  { %130 = vperm.xlu0 %598, %v72_v40   ;;  %398 = vperm.xlu1 %599, %v364_v43  }
  0x25   :  { %542 = vmatpush3.bf16.xpose.msra.mxu0 %v236_v37  ;;  %577 = vmatpush3.bf16.xpose.msra.mxu1 %v236_v37 }
  0x26   :  { %591 = vmatprep.subr.msk.bf16.mxu0 %vm198_vm0, %v43_v38  ;;  %592 = vmatprep.subr.msk.bf16.mxu1 %vm198_vm0, %v43_v38 }
  0x28   :  { %135 = vperm.xlu0 %598, %v73_v44   ;;  %403 = vperm.xlu1 %599, %v365_v47  }
  0x2c   :  { %140 = vperm.xlu0 %598, %v74_v48   ;;  %408 = vperm.xlu1 %599, %v366_v51  }
  0x2d   :  { %544 = vmatpush3.bf16.xpose.msra.mxu0 %v239_v45  ;;  %578 = vmatpush3.bf16.xpose.msra.mxu1 %v239_v45 }
  0x2e   :  { %593 = vmatprep.subr.msk.bf16.mxu0 %vm198_vm0, %v44_v46  ;;  %594 = vmatprep.subr.msk.bf16.mxu1 %vm198_vm0, %v44_v46 }
  0x30   :  { %145 = vperm.xlu0 %598, %v75_v52   ;;  %413 = vperm.xlu1 %599, %v367_v55  }
  0x34   :  { %150 = vperm.xlu0 %598, %v76_v56   ;;  %418 = vperm.xlu1 %599, %v368_v57  }
  0x35   :  { %546 = vmatpush3.bf16.xpose.msra.mxu0 %v242_v53  ;;  %579 = vmatpush3.bf16.xpose.msra.mxu1 %v242_v53 }
  0x36   :  { %595 = vmatprep.subr.msk.bf16.mxu0 %vm198_vm0, %v45_v54  ;;  %596 = vmatprep.subr.msk.bf16.mxu1 %vm198_vm0, %v45_v54 }
  0x38   :  { %155 = vperm.xlu0 %598, %v77_v58   ;;  %423 = vperm.xlu1 %599, %v369_v60  }
  0x3c   :  { %428 = vperm.xlu0 %598, %v370_v61   ;;  %433 = vperm.xlu1 %599, %v371_v0  }
  0x3d   :  { %548 = vmatpush3.bf16.xpose.msra.mxu0 %v245_v59  ;;  %580 = vmatpush3.bf16.xpose.msra.mxu1 %v245_v59 }
  0x40   :  { %438 = vperm.xlu0 %598, %v372_v3   ;;  %443 = vperm.xlu1 %599, %v373_v4  }
  0x44   :  { %550 = vmatmul.mubr.msk.bf16.vlgmr.msra.gmra.mrb[0].mxu0 %vm198_vm0, %v602_v62  ;;  %558 = vmatmul.mubr.msk.bf16.vlgmr.msra.gmra.mrb[0].mxu1 %vm198_vm0, %v603_v63 }
  0x45   :  { %553 = vmatprep.mubr.msk.bf16.mxu0 %vm198_vm0, %v604_v1  ;;  %561 = vmatprep.mubr.msk.bf16.mxu1 %vm198_vm0, %v605_v2 }
  0x46   :  { %448 = vperm.xlu0 %598, %v374_v5   ;;  %453 = vperm.xlu1 %599, %v375_v8  }
  0x4c   :  { %554 = vmatmul.mubr.msk.bf16.gmra.mrb[4].mxu0 %vm198_vm0, %v606_v6  ;;  %562 = vmatmul.mubr.msk.bf16.gmra.mrb[4].mxu1 %vm198_vm0, %v607_v7 }
  0x87   :  { %v81_v9 = vpop.permute.xlu0 %80  ;;  %v91_v10 = vpop.permute.xlu1 %90 }
  0x8b   :  { %v86_v11 = vpop.permute.xlu0 %85  ;;  %v96_v12 = vpop.permute.xlu1 %95 }
  0x8f   :  { %v101_v13 = vpop.permute.xlu0 %100  ;;  %v106_v14 = vpop.permute.xlu1 %105 }
  0x93   :  { %v111_v15 = vpop.permute.xlu0 %110  ;;  %v116_v16 = vpop.permute.xlu1 %115 }
  0x97   :  { %v379_v17 = vpop.permute.xlu0 %378  ;;  %v384_v18 = vpop.permute.xlu1 %383 }
  0x9b   :  { %v121_v19 = vpop.permute.xlu0 %120  ;;  %v389_v20 = vpop.permute.xlu1 %388 }
  0x9f   :  { %v126_v21 = vpop.permute.xlu0 %125  ;;  %v394_v22 = vpop.permute.xlu1 %393 }
  0xa3   :  { %v131_v23 = vpop.permute.xlu0 %130  ;;  %v399_v24 = vpop.permute.xlu1 %398 }
  0xa7   :  { %v136_v25 = vpop.permute.xlu0 %135  ;;  %v871_v26 = vpop.permute.xlu1 %403 }
  0xab   :  { %v141_v38 = vpop.permute.xlu0 %140  ;;  %v409_v39 = vpop.permute.xlu1 %408 }
  0xaf   :  { %v146_v52 = vpop.permute.xlu0 %145  ;;  %v414_v55 = vpop.permute.xlu1 %413 }
  0xb3   :  { %v151_v63 = vpop.permute.xlu0 %150  ;;  %v419_v4 = vpop.permute.xlu1 %418 }
 0x117   :  { %v551_v27 = vpop.f32.mrb[0].mxu0  ;;  %v559_v28 = vpop.f32.mrb[0].mxu1 }
 0x118   :  { %v281_v29 = vpop.f32.mrb[1].mxu0  ;;  %v313_v30 = vpop.f32.mrb[1].mxu1  ;;  %v290_v36 = vadd.f32 %v551_v27, %v91_v10  ;;  %v322_v0 = vadd.f32 %v559_v28, %v131_v23 }
 0x119   :  { %v552_v31 = vpop.f32.mrb[2].mxu0  ;;  %v560_v32 = vpop.f32.mrb[2].mxu1  ;;  %v282_v33 = vadd.f32 %v281_v29, %v81_v9  ;;  %v314_v56 = vadd.f32 %v313_v30, %v121_v19 }
 0x11a   :  { %v284_v34 = vpop.f32.mrb[3].mxu0  ;;  %v316_v35 = vpop.f32.mrb[3].mxu1  ;;  %v293_v40 = vadd.f32 %v552_v31, %v96_v12  ;;  %v325_v5 = vadd.f32 %v560_v32, %v136_v25 }
 0x11b   :  { %v285_v37 = vadd.f32 %v284_v34, %v86_v11  ;;  %608 = vtanh.f32 %v282_v33  ;;  %v317_v59 = vadd.f32 %v316_v35, %v126_v21 }
 0x11c   :  { %610 = vtanh.f32 %v290_v36 }
 0x11d   :  { %612 = vtanh.f32 %v285_v37 }
 0x11e   :  { %614 = vtanh.f32 %v293_v40 }
 0x11f   :  { %v555_v41 = vpop.f32.mrb[4].mxu0  ;;  %v563_v42 = vpop.f32.mrb[4].mxu1 }
 0x120   :  { %v297_v43 = vpop.f32.mrb[5].mxu0  ;;  %v329_v44 = vpop.f32.mrb[5].mxu1  ;;  %v306_v50 = vadd.f32 %v555_v41, %v111_v15  ;;  %v338_v19 = vadd.f32 %v563_v42, %v151_v63 }
 0x121   :  { %v298_v45 = vadd.f32 %v297_v43, %v101_v13  ;;  %v556_v46 = vpop.f32.mrb[6].mxu0  ;;  %v564_v47 = vpop.f32.mrb[6].mxu1  ;;  %v330_v9 = vadd.f32 %v329_v44, %v141_v38 }
 0x122   :  { %v300_v48 = vpop.f32.mrb[7].mxu0  ;;  %v332_v49 = vpop.f32.mrb[7].mxu1  ;;  %v309_v53 = vadd.f32 %v556_v46, %v116_v16 }
 0x123   :  { %616 = vtanh.f32 %v298_v45  ;;  %v301_v51 = vadd.f32 %v300_v48, %v106_v14  ;;  %v156_v13 = vpop.permute.xlu0 %155  ;;  %v333_v14 = vadd.f32 %v332_v49, %v146_v52 }
 0x124   :  { %618 = vtanh.f32 %v306_v50  ;;  %v341_v23 = vadd.f32 %v564_v47, %v156_v13 }
 0x125   :  { %v609_v54 = vpop.eup %608  ;;  %620 = vtanh.f32 %v301_v51 }
 0x126   :  { %v611_v57 = vpop.eup %610  ;;  %622 = vtanh.f32 %v309_v53  ;;  %v456_v60 = vmul.f32 %v609_v54, %v379_v17 }
 0x127   :  { %v613_v58 = vpop.eup %612  ;;  %624 = vtanh.f32 %v314_v56  ;;  %v458_v1 = vmul.f32 %v611_v57, %v389_v20  ;;  %v429_v28 = vpop.permute.xlu0 %428 }
 0x128   :  { %v457_v61 = vmul.f32 %v613_v58, %v384_v18  ;;  %v615_v62 = vpop.eup %614  ;;  %626 = vtanh.f32 %v317_v59  ;;  %v424_v18 = vpop.permute.xlu1 %423 }
 0x129   :  { %v459_v6 = vmul.f32 %v615_v62, %v394_v22  ;;  %628 = vtanh.f32 %v322_v0 }
 0x12a   :  { %v472_v2 = vadd.f32 %v457_v61, %v456_v60  ;;  %630 = vtanh.f32 %v325_v5  ;;  %v494_v61 = vstv %s884_s4 }
 0x12b   :  { %632 = vtanh.f32 %v330_v9  ;;  %v439_v38 = vpop.permute.xlu0 %438 }
 0x12c   :  { %v473_v7 = vadd.f32 %v472_v2, %v458_v1  ;;  %634 = vtanh.f32 %v333_v14  ;;  %v434_v32 = vpop.permute.xlu1 %433 }
 0x12d   :  { %v617_v3 = vpop.eup %616  ;;  %636 = vtanh.f32 %v338_v19 }
 0x12e   :  { %v460_v8 = vmul.f32 %v617_v3, %v399_v24  ;;  %v619_v10 = vpop.eup %618  ;;  %v474_v11 = vadd.f32 %v473_v7, %v459_v6  ;;  %638 = vtanh.f32 %v341_v23 }
 0x12f   :  { %v621_v12 = vpop.eup %620  ;;  %v462_v20 = vmul.f32 %v619_v10, %v409_v39  ;;  %v449_v49 = vpop.permute.xlu0 %448 }
 0x130   :  { %v475_v15 = vadd.f32 %v474_v11, %v460_v8  ;;  %v461_v16 = vmul.f32 %v621_v12, %v871_v26  ;;  %v623_v17 = vpop.eup %622  ;;  %v444_v42 = vpop.permute.xlu1 %443 }
 0x131   :  { %v625_v22 = vpop.eup %624  ;;  %v463_v24 = vmul.f32 %v623_v17, %v414_v55 }
 0x132   :  { %v476_v21 = vadd.f32 %v475_v15, %v461_v16  ;;  %v627_v27 = vpop.eup %626  ;;  %v464_v29 = vmul.f32 %v625_v22, %v419_v4 }
 0x133   :  { %v629_v31 = vpop.eup %628  ;;  %v465_v26 = vmul.f32 %v627_v27, %v424_v18 }
 0x134   :  { %v477_v25 = vadd.f32 %v476_v21, %v462_v20  ;;  %v631_v34 = vpop.eup %630  ;;  %v466_v35 = vmul.f32 %v629_v31, %v429_v28  ;;  %v454_v52 = vpop.permute.xlu1 %453 }
 0x135   :  { %v633_v37 = vpop.eup %632  ;;  %v467_v39 = vmul.f32 %v631_v34, %v434_v32 }
 0x136   :  { %v478_v30 = vadd.f32 %v477_v25, %v463_v24  ;;  %v635_v41 = vpop.eup %634  ;;  %v468_v43 = vmul.f32 %v633_v37, %v439_v38 }
 0x137   :  { %v637_v45 = vpop.eup %636  ;;  %v469_v46 = vmul.f32 %v635_v41, %v444_v42 }
 0x138   :  { %v479_v33 = vadd.f32 %v478_v30, %v464_v29  ;;  %v639_v48 = vpop.eup %638  ;;  %v470_v50 = vmul.f32 %v637_v45, %v449_v49 }
 0x139   :  { %v471_v53 = vmul.f32 %v639_v48, %v454_v52 }
 0x13a   :  { %v480_v36 = vadd.f32 %v479_v33, %v465_v26 }
 0x13c   :  { %v481_v40 = vadd.f32 %v480_v36, %v466_v35 }
 0x13e   :  { %v482_v44 = vadd.f32 %v481_v40, %v467_v39 }
 0x140   :  { %v483_v47 = vadd.f32 %v482_v44, %v468_v43 }
 0x142   :  { %v484_v51 = vadd.f32 %v483_v47, %v469_v46 }
 0x144   :  { %v485_v54 = vadd.f32 %v484_v51, %v470_v50 }
 0x146   :  { %v486_v55 = vadd.f32 %v485_v54, %v471_v53 }
 0x148   :  { %v487_v56 = vrot.slane %v486_v55, 4 }
 0x14a   :  { %v488_v57 = vadd.f32 %v487_v56, %v486_v55 }
 0x14c   :  { %v489_v58 = vrot.slane %v488_v57, 2 }
 0x14e   :  { %v490_v59 = vadd.f32 %v489_v58, %v488_v57 }
 0x150   :  { %v491_v60 = vrot.slane %v490_v59, 1 }
 0x152   :  { %v492_v62 = vadd.f32 %v491_v60, %v490_v59 }
 0x154   :  { %v495_v63 = vadd.f32 %v494_v61, %v492_v62 }
 0x156   :  { %496 = vst [vmem:[%s885_s5] sm:$0x1] %v495_v63 }

</bundles_post_ra>
